<compile_context>
chip_gen: v6e
topology: v6e:2x2x1
jax: 0.10.0
libtpu: 0.0.40
codegen_flags: <defaults>
</compile_context>

<pallas_src>
import functools

import jax
import jax.numpy as jnp
from jax import lax
from jax.experimental import pallas as pl
from jax.experimental.pallas import tpu as pltpu


def _round_up(x, m):
    return (x + m - 1) // m * m


def static_estimator_kernel(x_ref, w1_ref, b1_ref, w2_ref, b2_ref, o_ref, *, use_bf16):
    x = x_ref[...]            # (TB, D) f32 tile, DMA'd straight from HBM
    w1 = w1_ref[...]          # (H, D), VMEM-resident
    if use_bf16:
        x = x.astype(jnp.bfloat16)
        w1 = w1.astype(jnp.bfloat16)
    # fc1 on the MXU: contract D of both operands -> (H, TB), f32 accumulation.
    # Batch lands on the lane axis, so everything below is lane-dense.
    h = lax.dot_general(
        w1, x,
        dimension_numbers=(((1,), (1,)), ((), ())),
        preferred_element_type=jnp.float32,
    )
    # bias (H, 1) broadcast across lanes + ReLU on the VPU.
    h = jnp.maximum(h + b1_ref[...], 0.0)
    # fc2 (output width 1): VPU multiply + cross-sublane reduce (XLU) instead of a
    # wasteful N=1 MXU matmul.  Result is a lane-dense (1, TB) row -> unmasked stores.
    out = jnp.sum(h * w2_ref[...], axis=0, keepdims=True) + b2_ref[...]
    o_ref[...] = out.astype(o_ref.dtype)


def static_estimator(x, w1, b1, w2, b2, *, block_b=8192, use_bf16=False):
    """Fused MLP forward.

    Args (PyTorch nn.Linear layout):
      x : (B, input_dim) float32
      w1: (hidden_dim, input_dim),  b1: (hidden_dim,)
      w2: (1, hidden_dim),          b2: (1,)
    Returns (B, 1) in x.dtype.  use_bf16=False (default) keeps exact f32 semantics.
    """
    B, D = x.shape
    H = w1.shape[0]

    # Batch tile: multiple of 128 (lane-dense output stores), capped at block_b.
    # If the whole batch fits in one tile, use the exact batch size (full-array
    # block -> no (8,128) divisibility constraint, no padding anywhere).
    tb = min(_round_up(block_b, 128), _round_up(B, 128))
    if tb >= B:
        tb = B
    grid = (pl.cdiv(B, tb),)   # ragged last block handled by Pallas store masking

    # Layout plumbing on the tiny parameters only (a few KiB, negligible).
    b1c = b1.reshape(H, 1).astype(jnp.float32)
    w2c = w2.reshape(H, 1).astype(jnp.float32)
    b2c = b2.reshape(1, 1).astype(jnp.float32)

    flops = 2 * B * D * H + 5 * B * H
    bytes_accessed = (B * D * x.dtype.itemsize       # x read
                      + B * x.dtype.itemsize         # output write
                      + (H * D + 2 * H + 1) * 4)     # resident params

    out = pl.pallas_call(
        functools.partial(static_estimator_kernel, use_bf16=use_bf16),
        out_shape=jax.ShapeDtypeStruct((1, B), x.dtype),
        grid=grid,
        in_specs=[
            pl.BlockSpec((tb, D), lambda i: (i, 0)),   # x tile (no HBM transpose/pad pass)
            pl.BlockSpec((H, D), lambda i: (0, 0)),    # resident weights / biases
            pl.BlockSpec((H, 1), lambda i: (0, 0)),
            pl.BlockSpec((H, 1), lambda i: (0, 0)),
            pl.BlockSpec((1, 1), lambda i: (0, 0)),
        ],
        out_specs=pl.BlockSpec((1, tb), lambda i: (0, i)),
        compiler_params=pltpu.CompilerParams(
            dimension_semantics=("parallel",),          # megacore sharding where available
            vmem_limit_bytes=32 * 1024 * 1024,          # headroom for big tiles on v5e
        ),
        cost_estimate=pl.CostEstimate(
            flops=flops, transcendentals=0, bytes_accessed=bytes_accessed),
    )(x, w1, b1c, w2c, b2c)

    # (1, B) is contiguous -> trivial reshape to (B, 1); no padded rows to strip.
    return out.reshape(B, 1)


if __name__ == "__main__":
    batch = 1000          # exercises the ragged-last-block path when tiled
    input_dim = 16
    hidden_dim = 32

    key = jax.random.PRNGKey(0)
    kx, kw1, kb1, kw2, kb2 = jax.random.split(key, 5)

    x = jax.random.normal(kx, (batch, input_dim), dtype=jnp.float32)

    # Deterministic synthetic params in PyTorch nn.Linear layout / init range.
    bound1 = 1.0 / (input_dim ** 0.5)
    w1 = jax.random.uniform(kw1, (hidden_dim, input_dim), jnp.float32, -bound1, bound1)
    b1 = jax.random.uniform(kb1, (hidden_dim,), jnp.float32, -bound1, bound1)
    bound2 = 1.0 / (hidden_dim ** 0.5)
    w2 = jax.random.uniform(kw2, (1, hidden_dim), jnp.float32, -bound2, bound2)
    b2 = jax.random.uniform(kb2, (1,), jnp.float32, -bound2, bound2)

    out = static_estimator(x, w1, b1, w2, b2)                       # single-block, exact f32
    out_tiled = static_estimator(x, w1, b1, w2, b2, block_b=256)    # multi-block + ragged tail
    out_bf16 = static_estimator(x, w1, b1, w2, b2, use_bf16=True)   # optional bf16 MXU path
    jax.block_until_ready((out, out_tiled, out_bf16))

    # Plain-JAX reference with the module's exact f32 semantics.
    ref = jnp.maximum(x @ w1.T + b1, 0.0) @ w2.T + b2

    assert out.shape == (batch, 1)
    assert out_tiled.shape == (batch, 1)
    assert jnp.allclose(out, ref, atol=1e-5, rtol=1e-5)
    assert jnp.allclose(out_tiled, ref, atol=1e-5, rtol=1e-5)
    # bf16 fc1 operands: small, bounded accuracy loss on this 16->32->1 MLP.
    assert jnp.allclose(out_bf16, ref, atol=5e-2, rtol=5e-2)

    print("KERNEL_OK")
</pallas_src>

<mosaic_0001>
module attributes {stable_mosaic.version = 11 : i64} {
  func.func @static_estimator_kernel(%arg0: i32, %arg1: memref<1000x16xf32, #tpu.memory_space<vmem>>, %arg2: memref<32x16xf32, #tpu.memory_space<vmem>>, %arg3: memref<32x1xf32, #tpu.memory_space<vmem>>, %arg4: memref<32x1xf32, #tpu.memory_space<vmem>>, %arg5: memref<1x1xf32, #tpu.memory_space<vmem>>, %arg6: memref<1x1000xf32, #tpu.memory_space<vmem>>) attributes {dimension_semantics = [#tpu.dimension_semantics<parallel>], iteration_bounds = array<i64: 1>, scalar_prefetch = 0 : i64, scratch_operands = 0 : i64, tpu.core_type = #tpu.core_type<tc>, window_params = [{transform_indices = @transform_0, window_bounds = array<i64: 1000, 16>}, {pipeline_mode = #tpu.pipeline_mode<synchronous>, transform_indices = @transform_1, window_bounds = array<i64: 32, 16>}, {pipeline_mode = #tpu.pipeline_mode<synchronous>, transform_indices = @transform_2, window_bounds = array<i64: 32, 1>}, {pipeline_mode = #tpu.pipeline_mode<synchronous>, transform_indices = @transform_3, window_bounds = array<i64: 32, 1>}, {pipeline_mode = #tpu.pipeline_mode<synchronous>, transform_indices = @transform_4, window_bounds = array<i64: 1, 1>}, {transform_indices = @transform_5, window_bounds = array<i64: 1, 1000>}]} {
    %c0 = arith.constant 0 : index
    %c0_0 = arith.constant 0 : index
    %0 = vector.load %arg1[%c0, %c0_0] : memref<1000x16xf32, #tpu.memory_space<vmem>>, vector<1000x16xf32>
    %c0_1 = arith.constant 0 : index
    %c0_2 = arith.constant 0 : index
    %1 = vector.load %arg2[%c0_1, %c0_2] : memref<32x16xf32, #tpu.memory_space<vmem>>, vector<32x16xf32>
    %cst = arith.constant dense<0.000000e+00> : vector<32x1000xf32>
    %2 = tpu.matmul %1, %0, %cst {dimension_numbers = #tpu.dot_dimension_numbers<[1], [1], [0], [0], [0, 0, 1, 0], [], []>} : vector<32x16xf32>, vector<1000x16xf32>, vector<32x1000xf32> -> vector<32x1000xf32>
    %c0_3 = arith.constant 0 : index
    %c0_4 = arith.constant 0 : index
    %3 = vector.load %arg3[%c0_3, %c0_4] : memref<32x1xf32, #tpu.memory_space<vmem>>, vector<32x1xf32>
    %4 = vector.broadcast %3 : vector<32x1xf32> to vector<32x1000xf32>
    %5 = arith.addf %2, %4 : vector<32x1000xf32>
    %cst_5 = arith.constant 0.000000e+00 : f32
    %6 = vector.broadcast %cst_5 : f32 to vector<32x1000xf32>
    %7 = arith.maximumf %5, %6 : vector<32x1000xf32>
    %c0_6 = arith.constant 0 : index
    %c0_7 = arith.constant 0 : index
    %8 = vector.load %arg4[%c0_6, %c0_7] : memref<32x1xf32, #tpu.memory_space<vmem>>, vector<32x1xf32>
    %9 = vector.broadcast %8 : vector<32x1xf32> to vector<32x1000xf32>
    %10 = arith.mulf %7, %9 : vector<32x1000xf32>
    %cst_8 = arith.constant dense<0.000000e+00> : vector<1000xf32>
    %11 = vector.multi_reduction <add>, %10, %cst_8 [0] : vector<32x1000xf32> to vector<1000xf32>
    %12 = vector.shape_cast %11 : vector<1000xf32> to vector<1x1000xf32>
    %c0_9 = arith.constant 0 : index
    %c0_10 = arith.constant 0 : index
    %13 = vector.load %arg5[%c0_9, %c0_10] : memref<1x1xf32, #tpu.memory_space<vmem>>, vector<1x1xf32>
    %14 = vector.broadcast %13 : vector<1x1xf32> to vector<1x1000xf32>
    %15 = arith.addf %12, %14 : vector<1x1000xf32>
    %c0_11 = arith.constant 0 : index
    %c0_12 = arith.constant 0 : index
    %16 = vector.load %arg6[%c0_11, %c0_12] : memref<1x1000xf32, #tpu.memory_space<vmem>>, vector<1x1000xf32>
    tpu.vector_store %arg6[%c0_11, %c0_12], %15 {strides = array<i32>} : memref<1x1000xf32, #tpu.memory_space<vmem>>, vector<1x1000xf32>,
    return
  }
  func.func @transform_0(%arg0: i32) -> (i32, i32) {
    %c0_i32 = arith.constant 0 : i32
    %c0_i32_0 = arith.constant 0 : i32
    return %arg0, %c0_i32 : i32, i32
  }
  func.func @transform_1(%arg0: i32) -> (i32, i32) {
    %c0_i32 = arith.constant 0 : i32
    %c0_i32_0 = arith.constant 0 : i32
    %c0_i32_1 = arith.constant 0 : i32
    return %c0_i32, %c0_i32_0 : i32, i32
  }
  func.func @transform_2(%arg0: i32) -> (i32, i32) {
    %c0_i32 = arith.constant 0 : i32
    %c0_i32_0 = arith.constant 0 : i32
    %c0_i32_1 = arith.constant 0 : i32
    return %c0_i32, %c0_i32_0 : i32, i32
  }
  func.func @transform_3(%arg0: i32) -> (i32, i32) {
    %c0_i32 = arith.constant 0 : i32
    %c0_i32_0 = arith.constant 0 : i32
    %c0_i32_1 = arith.constant 0 : i32
    return %c0_i32, %c0_i32_0 : i32, i32
  }
  func.func @transform_4(%arg0: i32) -> (i32, i32) {
    %c0_i32 = arith.constant 0 : i32
    %c0_i32_0 = arith.constant 0 : i32
    %c0_i32_1 = arith.constant 0 : i32
    return %c0_i32, %c0_i32_0 : i32, i32
  }
  func.func @transform_5(%arg0: i32) -> (i32, i32) {
    %c0_i32 = arith.constant 0 : i32
    %c0_i32_0 = arith.constant 0 : i32
    return %c0_i32, %arg0 : i32, i32
  }
}

</mosaic_0001>

<bundles_post_ra>
// kernel: tpu_custom_call.1
= control target key start
LH: loop header
LB: loop body
LE: loop exit
PB: predicated region body
PF: predicated region fallthrough
CT: control target
= control target key end

     0   :  { %s2232_s0 = inlined_call_operand.vmem [shape: f32[1000,16], index: 0, kind: input, shape index: {}]   ;;  %s2233_s1 = inlined_call_operand.vmem [shape: f32[32,16], index: 1, kind: input, shape index: {}]   ;;  %s2234_s2 = inlined_call_operand.vmem [shape: f32[32,1], index: 2, kind: input, shape index: {}]   ;;  %s2235_s3 = inlined_call_operand.vmem [shape: f32[32,1], index: 3, kind: input, shape index: {}]   ;;  %s2236_s4 = inlined_call_operand.<no memory space> [shape: f32[1,1], index: 4, kind: input, shape index: {}]   ;;  %s2237_s5 = inlined_call_operand.hbm [shape: f32[1,1000], index: 5, kind: output, shape index: {}]  }
   0x1   :  { %v10_v0 = vstv %s2236_s4 }
   0x2   :  { %11 = vst [vmem:[#allocation2] sm:$0x1] %v10_v0 }
   0x3   :  { %v54_v1 = vld [vmem:[%s2232_s0 + $0xf8] sm:$0xff]  ;;  %vm176_vm0 = vcmask 130048   ;;  %v53_v5 = vld [vmem:[%s2232_s0 + $0xf0] sm:$0xff]  ;;  %v52_v9 = vld [vmem:[%s2232_s0 + $0xe8] sm:$0xff]  ;;  %v1469_v11 = vmov 0  }
   0x4   :  { %v86_v2 = vld [vmem:[%s2232_s0 + $0x1f8] sm:$0xff]  ;;  %1321 = vmatprep.subr.msk.mxu0 %vm176_vm0, %v54_v1  ;;  %v85_v6 = vld [vmem:[%s2232_s0 + $0x1f0] sm:$0xff]  ;;  %v84_v10 = vld [vmem:[%s2232_s0 + $0x1e8] sm:$0xff]  ;;  %1445 = vset.pattern.permute.xlu0 %v1469_v11 }
   0x5   :  { %v38_v3 = vld [vmem:[%s2232_s0 + $0x78] sm:$0xff]  ;;  %1361 = vmatprep.subr.msk.mxu1 %vm176_vm0, %v86_v2  ;;  %v37_v7 = vld [vmem:[%s2232_s0 + $0x70] sm:$0xff]  ;;  %1446 = vset.pattern.permute.xlu1 %v1469_v11  ;;  %v36_v12 = vld [vmem:[%s2232_s0 + $0x68] sm:$0xff] }
   0x6   :  { %v70_v4 = vld [vmem:[%s2232_s0 + $0x178] sm:$0xff]  ;;  %1322 = vmatpush3.xpose.msk.msra.mxu0 %vm176_vm0, %v38_v3  ;;  %v69_v8 = vld [vmem:[%s2232_s0 + $0x170] sm:$0xff]  ;;  %v68_v13 = vld [vmem:[%s2232_s0 + $0x168] sm:$0xff] }
   0x7   :  { %1362 = vmatpush3.xpose.msk.msra.mxu1 %vm176_vm0, %v70_v4  ;;  %1323 = vmatprep.subr.msk.mxu0 %vm176_vm0, %v53_v5  ;;  %v51_v14 = vld [vmem:[%s2232_s0 + $0xe0] sm:$0xff]  ;;  %v50_v18 = vld [vmem:[%s2232_s0 + $0xd8] sm:$0xff]  ;;  %v49_v22 = vld [vmem:[%s2232_s0 + $0xd0] sm:$0xff] }
   0x8   :  { %1363 = vmatprep.subr.msk.mxu1 %vm176_vm0, %v85_v6  ;;  %v83_v15 = vld [vmem:[%s2232_s0 + $0x1e0] sm:$0xff]  ;;  %v82_v19 = vld [vmem:[%s2232_s0 + $0x1d8] sm:$0xff]  ;;  %v81_v23 = vld [vmem:[%s2232_s0 + $0x1d0] sm:$0xff] }
   0x9   :  { %v35_v16 = vld [vmem:[%s2232_s0 + $0x60] sm:$0xff]  ;;  %v34_v20 = vld [vmem:[%s2232_s0 + $0x58] sm:$0xff]  ;;  %v33_v24 = vld [vmem:[%s2232_s0 + $0x50] sm:$0xff] }
   0xa   :  { %1324 = vmatpush3.xpose.msk.msra.mxu0 %vm176_vm0, %v37_v7  ;;  %v67_v17 = vld [vmem:[%s2232_s0 + $0x160] sm:$0xff]  ;;  %v66_v21 = vld [vmem:[%s2232_s0 + $0x158] sm:$0xff]  ;;  %v65_v25 = vld [vmem:[%s2232_s0 + $0x150] sm:$0xff] }
   0xb   :  { %1364 = vmatpush3.xpose.msk.msra.mxu1 %vm176_vm0, %v69_v8  ;;  %1325 = vmatprep.subr.msk.mxu0 %vm176_vm0, %v52_v9  ;;  %v48_v26 = vld [vmem:[%s2232_s0 + $0xc8] sm:$0xff]  ;;  %v1609_v28 = vld [vmem:[%s2233_s1] sm:$0xff]  ;;  %v46_v35 = vld [vmem:[%s2232_s0 + $0xb8] sm:$0xff] }
   0xc   :  { %1365 = vmatprep.subr.msk.mxu1 %vm176_vm0, %v84_v10  ;;  %v80_v27 = vld [vmem:[%s2232_s0 + $0x1c8] sm:$0xff]  ;;  %v47_v31 = vld [vmem:[%s2232_s0 + $0xc0] sm:$0xff]  ;;  %1353 = vmatprep.mubr.msk.f32.mxu0 %vm176_vm0, %v1609_v28  ;;  %v78_v36 = vld [vmem:[%s2232_s0 + $0x1b8] sm:$0xff] }
   0xd   :  { %v32_v29 = vld [vmem:[%s2232_s0 + $0x48] sm:$0xff]  ;;  %v79_v32 = vld [vmem:[%s2232_s0 + $0x1c0] sm:$0xff]  ;;  %1393 = vmatprep.mubr.msk.f32.mxu1 %vm176_vm0, %v1609_v28  ;;  %v30_v37 = vld [vmem:[%s2232_s0 + $0x38] sm:$0xff] }
   0xe   :  { %1326 = vmatpush3.xpose.msk.msra.mxu0 %vm176_vm0, %v36_v12  ;;  %v64_v30 = vld [vmem:[%s2232_s0 + $0x148] sm:$0xff]  ;;  %v31_v33 = vld [vmem:[%s2232_s0 + $0x40] sm:$0xff]  ;;  %v62_v38 = vld [vmem:[%s2232_s0 + $0x138] sm:$0xff] }
   0xf   :  { %1366 = vmatpush3.xpose.msk.msra.mxu1 %vm176_vm0, %v68_v13  ;;  %1327 = vmatprep.subr.msk.mxu0 %vm176_vm0, %v51_v14  ;;  %v63_v34 = vld [vmem:[%s2232_s0 + $0x140] sm:$0xff]  ;;  %v45_v39 = vld [vmem:[%s2232_s0 + $0xb0] sm:$0xff]  ;;  %v44_v44 = vld [vmem:[%s2232_s0 + $0xa8] sm:$0xff] }
  0x10   :  { %1367 = vmatprep.subr.msk.mxu1 %vm176_vm0, %v83_v15  ;;  %v77_v40 = vld [vmem:[%s2232_s0 + $0x1b0] sm:$0xff]  ;;  %v152_v43 = vld [vmem:[%s2234_s2] sm:$0xff]  ;;  %v76_v45 = vld [vmem:[%s2232_s0 + $0x1a8] sm:$0xff] }
  0x11   :  { %v29_v41 = vld [vmem:[%s2232_s0 + $0x30] sm:$0xff]  ;;  %158 = vperm.xlu0 %1445, %v152_v43   ;;  %v153_v47 = vld [vmem:[%s2234_s2 + $0x8] sm:$0xff]  ;;  %v155_v48 = vld [vmem:[%s2234_s2 + $0x18] sm:$0xff] }
  0x12   :  { %1328 = vmatpush3.xpose.msk.msra.mxu0 %vm176_vm0, %v35_v16  ;;  %v61_v42 = vld [vmem:[%s2232_s0 + $0x130] sm:$0xff]  ;;  %v28_v49 = vld [vmem:[%s2232_s0 + $0x28] sm:$0xff]  ;;  %v43_v51 = vld [vmem:[%s2232_s0 + $0xa0] sm:$0xff] }
  0x13   :  { %1368 = vmatpush3.xpose.msk.msra.mxu1 %vm176_vm0, %v67_v17  ;;  %1329 = vmatprep.subr.msk.mxu0 %vm176_vm0, %v50_v18  ;;  %v154_v46 = vld [vmem:[%s2234_s2 + $0x10] sm:$0xff]  ;;  %v60_v50 = vld [vmem:[%s2232_s0 + $0x128] sm:$0xff]  ;;  %v75_v52 = vld [vmem:[%s2232_s0 + $0x1a0] sm:$0xff] }
  0x14   :  { %1369 = vmatprep.subr.msk.mxu1 %vm176_vm0, %v82_v19  ;;  %168 = vperm.xlu1 %1446, %v154_v46   ;;  %v952_v53 = vld [vmem:[%s2235_s3] sm:$0xff]  ;;  %v953_v54 = vld [vmem:[%s2235_s3 + $0x8] sm:$0xff]  ;;  %v42_v57 = vld [vmem:[%s2232_s0 + $0x98] sm:$0xff] }
  0x15   :  { %163 = vperm.xlu0 %1445, %v153_v47   ;;  %v27_v55 = vld [vmem:[%s2232_s0 + $0x20] sm:$0xff]  ;;  %v74_v58 = vld [vmem:[%s2232_s0 + $0x198] sm:$0xff]  ;;  %v954_v59 = vld [vmem:[%s2235_s3 + $0x10] sm:$0xff] }
  0x16   :  { %1330 = vmatpush3.xpose.msk.msra.mxu0 %vm176_vm0, %v34_v20  ;;  %v59_v56 = vld [vmem:[%s2232_s0 + $0x120] sm:$0xff] }
  0x17   :  { %1370 = vmatpush3.xpose.msk.msra.mxu1 %vm176_vm0, %v66_v21  ;;  %1331 = vmatprep.subr.msk.mxu0 %vm176_vm0, %v49_v22 }
  0x18   :  { %1371 = vmatprep.subr.msk.mxu1 %vm176_vm0, %v81_v23  ;;  %173 = vperm.xlu1 %1446, %v155_v48  }
  0x19   :  { %958 = vperm.xlu0 %1445, %v952_v53  }
  0x1a   :  { %1332 = vmatpush3.xpose.msk.msra.mxu0 %vm176_vm0, %v33_v24 }
  0x1b   :  { %1372 = vmatpush3.xpose.msk.msra.mxu1 %vm176_vm0, %v65_v25  ;;  %1333 = vmatprep.subr.msk.mxu0 %vm176_vm0, %v48_v26 }
  0x1c   :  { %1373 = vmatprep.subr.msk.mxu1 %vm176_vm0, %v80_v27  ;;  %963 = vperm.xlu1 %1446, %v953_v54  }
  0x1e   :  { %1334 = vmatpush3.xpose.msk.msra.mxu0 %vm176_vm0, %v32_v29 }
  0x1f   :  { %1374 = vmatpush3.xpose.msk.msra.mxu1 %vm176_vm0, %v64_v30  ;;  %1335 = vmatprep.subr.msk.mxu0 %vm176_vm0, %v47_v31 }
  0x20   :  { %1375 = vmatprep.subr.msk.mxu1 %vm176_vm0, %v79_v32 }
  0x22   :  { %1336 = vmatpush3.xpose.msk.msra.mxu0 %vm176_vm0, %v31_v33 }
  0x23   :  { %1376 = vmatpush3.xpose.msk.msra.mxu1 %vm176_vm0, %v63_v34  ;;  %1337 = vmatprep.subr.msk.mxu0 %vm176_vm0, %v46_v35 }
  0x24   :  { %1377 = vmatprep.subr.msk.mxu1 %vm176_vm0, %v78_v36 }
  0x26   :  { %1338 = vmatpush3.xpose.msk.msra.mxu0 %vm176_vm0, %v30_v37 }
  0x27   :  { %1378 = vmatpush3.xpose.msk.msra.mxu1 %vm176_vm0, %v62_v38  ;;  %1339 = vmatprep.subr.msk.mxu0 %vm176_vm0, %v45_v39 }
  0x28   :  { %1379 = vmatprep.subr.msk.mxu1 %vm176_vm0, %v77_v40 }
  0x2a   :  { %1340 = vmatpush3.xpose.msk.msra.mxu0 %vm176_vm0, %v29_v41 }
  0x2b   :  { %1380 = vmatpush3.xpose.msk.msra.mxu1 %vm176_vm0, %v61_v42  ;;  %1341 = vmatprep.subr.msk.mxu0 %vm176_vm0, %v44_v44 }
  0x2c   :  { %1381 = vmatprep.subr.msk.mxu1 %vm176_vm0, %v76_v45 }
  0x2e   :  { %1342 = vmatpush3.xpose.msk.msra.mxu0 %vm176_vm0, %v28_v49 }
  0x2f   :  { %1382 = vmatpush3.xpose.msk.msra.mxu1 %vm176_vm0, %v60_v50  ;;  %1343 = vmatprep.subr.msk.mxu0 %vm176_vm0, %v43_v51 }
  0x30   :  { %1383 = vmatprep.subr.msk.mxu1 %vm176_vm0, %v75_v52 }
  0x31   :  { %12 = vsyncpa [#allocation4], 0  ;;  %v955_v60 = vld [vmem:[%s2235_s3 + $0x18] sm:$0xff]  ;;  %v41_v63 = vld [vmem:[%s2232_s0 + $0x90] sm:$0xff]  ;;  %968 = vperm.xlu0 %1445, %v954_v59   ;;  %v1470_v13 = vmov 0.0   ;;  %vm1071_vm1 = vcmask 850944  }
  0x32   :  { %1344 = vmatpush3.xpose.msk.msra.mxu0 %vm176_vm0, %v27_v55  ;;  %v26_v61 = vld [vmem:[%s2232_s0 + $0x18] sm:$0xff]  ;;  %v73_v0 = vld [vmem:[%s2232_s0 + $0x190] sm:$0xff]  ;;  %973 = vperm.xlu1 %1446, %v955_v60   ;;  %v1085_v1 = vld [vmem:[#allocation2] sm:$0x1] }
  0x33   :  { %1384 = vmatpush3.xpose.msk.msra.mxu1 %vm176_vm0, %v59_v56  ;;  %1345 = vmatprep.subr.msk.mxu0 %vm176_vm0, %v42_v57  ;;  %v58_v62 = vld [vmem:[%s2232_s0 + $0x118] sm:$0xff]  ;;  %v25_v2 = vld [vmem:[%s2232_s0 + $0x10] sm:$0xff]  ;;  %v40_v4 = vld [vmem:[%s2232_s0 + $0x88] sm:$0xff] }
  0x34   :  { %1385 = vmatprep.subr.msk.mxu1 %vm176_vm0, %v74_v58  ;;  %v57_v3 = vld [vmem:[%s2232_s0 + $0x110] sm:$0xff]  ;;  %v72_v5 = vld [vmem:[%s2232_s0 + $0x188] sm:$0xff]  ;;  %v39_v8 = vld [vmem:[%s2232_s0 + $0x80] sm:$0xff] }
  0x35   :  { %1088 = vperm.xlu0 %1445, %v1085_v1   ;;  %v24_v6 = vld [vmem:[%s2232_s0 + $0x8] sm:$0xff]  ;;  %v71_v9 = vld [vmem:[%s2232_s0 + $0x180] sm:$0xff]  ;;  %v118_v12 = vld [vmem:[%s2232_s0 + $0x2f8] sm:$0xff] }
  0x36   :  { %1346 = vmatpush3.xpose.msk.msra.mxu0 %vm176_vm0, %v26_v61  ;;  %v56_v7 = vld [vmem:[%s2232_s0 + $0x108] sm:$0xff]  ;;  %v23_v10 = vld [vmem:[%s2232_s0] sm:$0xff]  ;;  %v134_v14 = vld [vmem:[%s2232_s0 + $0x378] sm:$0xff] }
  0x37   :  { %1386 = vmatpush3.xpose.msk.msra.mxu1 %vm176_vm0, %v58_v62  ;;  %1347 = vmatprep.subr.msk.mxu0 %vm176_vm0, %v41_v63  ;;  %v55_v11 = vld [vmem:[%s2232_s0 + $0x100] sm:$0xff]  ;;  %v1805_v15 = vld [vmem:[%s2233_s1 + $0x8] sm:$0xff]  ;;  %v102_v16 = vld [vmem:[%s2232_s0 + $0x278] sm:$0xff] }
  0x38   :  { %1387 = vmatprep.subr.msk.mxu1 %vm176_vm0, %v73_v0  ;;  %v133_v17 = vld [vmem:[%s2232_s0 + $0x370] sm:$0xff]  ;;  %v132_v20 = vld [vmem:[%s2232_s0 + $0x368] sm:$0xff]  ;;  %v1849_v21 = vld [vmem:[%s2233_s1 + $0x18] sm:$0xff] }
  0x39   :  { %v1827_v18 = vld [vmem:[%s2233_s1 + $0x10] sm:$0xff]  ;;  %v131_v23 = vld [vmem:[%s2232_s0 + $0x360] sm:$0xff]  ;;  %v116_v24 = vld [vmem:[%s2232_s0 + $0x2e8] sm:$0xff] }
  0x3a   :  { %1348 = vmatpush3.xpose.msk.msra.mxu0 %vm176_vm0, %v25_v2  ;;  %v117_v19 = vld [vmem:[%s2232_s0 + $0x2f0] sm:$0xff]  ;;  %v100_v25 = vld [vmem:[%s2232_s0 + $0x268] sm:$0xff]  ;;  %v115_v26 = vld [vmem:[%s2232_s0 + $0x2e0] sm:$0xff] }
  0x3b   :  { %1388 = vmatpush3.xpose.msk.msra.mxu1 %vm176_vm0, %v57_v3  ;;  %1349 = vmatprep.subr.msk.mxu0 %vm176_vm0, %v40_v4  ;;  %v101_v22 = vld [vmem:[%s2232_s0 + $0x270] sm:$0xff]  ;;  %v130_v27 = vld [vmem:[%s2232_s0 + $0x358] sm:$0xff]  ;;  %v99_v29 = vld [vmem:[%s2232_s0 + $0x260] sm:$0xff] }
  0x3c   :  { %1389 = vmatprep.subr.msk.mxu1 %vm176_vm0, %v72_v5  ;;  %v114_v30 = vld [vmem:[%s2232_s0 + $0x2d8] sm:$0xff]  ;;  %v129_v31 = vld [vmem:[%s2232_s0 + $0x350] sm:$0xff]  ;;  %v128_v34 = vld [vmem:[%s2232_s0 + $0x348] sm:$0xff] }
  0x3d   :  { %v98_v32 = vld [vmem:[%s2232_s0 + $0x258] sm:$0xff]  ;;  %v113_v33 = vld [vmem:[%s2232_s0 + $0x2d0] sm:$0xff]  ;;  %v112_v36 = vld [vmem:[%s2232_s0 + $0x2c8] sm:$0xff] }
  0x3e   :  { %1350 = vmatpush3.xpose.msk.msra.mxu0 %vm176_vm0, %v24_v6  ;;  %v97_v35 = vld [vmem:[%s2232_s0 + $0x250] sm:$0xff]  ;;  %v127_v37 = vld [vmem:[%s2232_s0 + $0x340] sm:$0xff]  ;;  %v96_v38 = vld [vmem:[%s2232_s0 + $0x248] sm:$0xff] }
  0x3f   :  { %1390 = vmatpush3.xpose.msk.msra.mxu1 %vm176_vm0, %v56_v7  ;;  %1351 = vmatprep.subr.msk.mxu0 %vm176_vm0, %v39_v8  ;;  %v111_v39 = vld [vmem:[%s2232_s0 + $0x2c0] sm:$0xff]  ;;  %v126_v40 = vld [vmem:[%s2232_s0 + $0x338] sm:$0xff]  ;;  %v125_v43 = vld [vmem:[%s2232_s0 + $0x330] sm:$0xff] }
  0x40   :  { %1391 = vmatprep.subr.msk.mxu1 %vm176_vm0, %v71_v9  ;;  %v95_v41 = vld [vmem:[%s2232_s0 + $0x240] sm:$0xff]  ;;  %v110_v42 = vld [vmem:[%s2232_s0 + $0x2b8] sm:$0xff]  ;;  %v109_v45 = vld [vmem:[%s2232_s0 + $0x2b0] sm:$0xff] }
  0x41   :  { %v94_v44 = vld [vmem:[%s2232_s0 + $0x238] sm:$0xff]  ;;  %v124_v46 = vld [vmem:[%s2232_s0 + $0x328] sm:$0xff]  ;;  %v93_v47 = vld [vmem:[%s2232_s0 + $0x230] sm:$0xff] }
  0x42   :  { %1352 = vmatpush3.xpose.msk.msra.mxu0 %vm176_vm0, %v23_v10  ;;  %v108_v48 = vld [vmem:[%s2232_s0 + $0x2a8] sm:$0xff]  ;;  %v123_v49 = vld [vmem:[%s2232_s0 + $0x320] sm:$0xff]  ;;  %v122_v52 = vld [vmem:[%s2232_s0 + $0x318] sm:$0xff] }
  0x43   :  { %1392 = vmatpush3.xpose.msk.msra.mxu1 %vm176_vm0, %v55_v11  ;;  %1401 = vmatprep.subr.msk.mxu0 %vm176_vm0, %v118_v12  ;;  %v92_v50 = vld [vmem:[%s2232_s0 + $0x228] sm:$0xff]  ;;  %v107_v51 = vld [vmem:[%s2232_s0 + $0x2a0] sm:$0xff]  ;;  %v106_v54 = vld [vmem:[%s2232_s0 + $0x298] sm:$0xff] }
  0x44   :  { %831 = vmatprep.subr.mxu1 %v1470_v13  ;;  %v91_v53 = vld [vmem:[%s2232_s0 + $0x220] sm:$0xff]  ;;  %v121_v55 = vld [vmem:[%s2232_s0 + $0x310] sm:$0xff]  ;;  %v90_v56 = vld [vmem:[%s2232_s0 + $0x218] sm:$0xff] }
  0x45   :  { %1354 = vmatmul.mubr.msk.f32.vlgmr.msra.gmra.mxu0 %vm176_vm0, %v1609_v28  ;;  %v105_v57 = vld [vmem:[%s2232_s0 + $0x290] sm:$0xff]  ;;  %v120_v58 = vld [vmem:[%s2232_s0 + $0x308] sm:$0xff]  ;;  %v119_v61 = vld [vmem:[%s2232_s0 + $0x300] sm:$0xff] }
  0x46   :  { %1394 = vmatmul.mubr.msk.f32.vlgmr.msra.gmra.mxu1 %vm176_vm0, %v1609_v28  ;;  %1355 = vmatprep.mubr.msk.f32.mxu0 %vm176_vm0, %v1805_v15  ;;  %v89_v59 = vld [vmem:[%s2232_s0 + $0x210] sm:$0xff]  ;;  %v104_v60 = vld [vmem:[%s2232_s0 + $0x288] sm:$0xff]  ;;  %v103_v63 = vld [vmem:[%s2232_s0 + $0x280] sm:$0xff] }
  0x47   :  { %1288 = vmatpush1.xpose.msk.msra.mxu1 %vm176_vm0, %v134_v14  ;;  %1395 = vmatprep.mubr.msk.f32.mxu1 %vm176_vm0, %v1805_v15  ;;  %v88_v62 = vld [vmem:[%s2232_s0 + $0x208] sm:$0xff]  ;;  %v147_v0 = vld [vmem:[%s2232_s0 + $0x3e0] sm:$0xff]  ;;  %v146_v2 = vld [vmem:[%s2232_s0 + $0x3d8] sm:$0xff] }
  0x48   :  { %833 = vmatprep.subr.mxu1 %v1470_v13  ;;  %1402 = vmatpush3.xpose.msk.msra.mxu0 %vm176_vm0, %v102_v16  ;;  %v87_v1 = vld [vmem:[%s2232_s0 + $0x200] sm:$0xff]  ;;  %v145_v3 = vld [vmem:[%s2232_s0 + $0x3d0] sm:$0xff]  ;;  %v144_v4 = vld [vmem:[%s2232_s0 + $0x3c8] sm:$0xff] }
  0x49   :  { %1356 = vmatmul.mubr.msk.f32.gmra.mxu0 %vm176_vm0, %v1805_v15  ;;  %1403 = vmatprep.subr.msk.mxu0 %vm176_vm0, %v117_v19  ;;  %v143_v5 = vld [vmem:[%s2232_s0 + $0x3c0] sm:$0xff]  ;;  %v142_v6 = vld [vmem:[%s2232_s0 + $0x3b8] sm:$0xff]  ;;  %v141_v7 = vld [vmem:[%s2232_s0 + $0x3b0] sm:$0xff] }
  0x4a   :  { %1396 = vmatmul.mubr.msk.f32.gmra.mxu1 %vm176_vm0, %v1805_v15  ;;  %1357 = vmatprep.mubr.msk.f32.mxu0 %vm176_vm0, %v1827_v18  ;;  %v140_v8 = vld [vmem:[%s2232_s0 + $0x3a8] sm:$0xff]  ;;  %v139_v9 = vld [vmem:[%s2232_s0 + $0x3a0] sm:$0xff]  ;;  %v138_v10 = vld [vmem:[%s2232_s0 + $0x398] sm:$0xff] }
  0x4b   :  { %1289 = vmatpush1.xpose.msk.msra.mxu1 %vm176_vm0, %v133_v17  ;;  %1397 = vmatprep.mubr.msk.f32.mxu1 %vm176_vm0, %v1827_v18  ;;  %v137_v11 = vld [vmem:[%s2232_s0 + $0x390] sm:$0xff]  ;;  %v136_v12 = vld [vmem:[%s2232_s0 + $0x388] sm:$0xff]  ;;  %v135_v14 = vld [vmem:[%s2232_s0 + $0x380] sm:$0xff]  ;;  %s1472_s0 = smov [#allocation3]  }
  0x4c   :  { %835 = vmatprep.subr.mxu1 %v1470_v13  ;;  %1404 = vmatpush3.xpose.msk.msra.mxu0 %vm176_vm0, %v101_v22  ;;  %s1172_s2 = sshll.u32 %s1472_s0, 4  ;;  %s1173_s2 = int_to_ptr.vmem [resolvable:$true] %s1172_s2 }
  0x4d   :  { %1358 = vmatmul.mubr.msk.f32.gmra.mxu0 %vm176_vm0, %v1827_v18  ;;  %1405 = vmatprep.subr.msk.mxu0 %vm176_vm0, %v116_v24  ;;  %s1447_s18 = scalar_lea.vmem %s1173_s2, 128  ;;  %p1452_p1 = scmp.lt.s32.totalorder %s1173_s2, %s1173_s2 }
  0x4e   :  { %1398 = vmatmul.mubr.msk.f32.gmra.mxu1 %vm176_vm0, %v1827_v18  ;;  %1359 = vmatprep.mubr.msk.f32.mxu0 %vm176_vm0, %v1849_v21  ;;  %p1448_p0 = scmp.ne.s32.totalorder %s1173_s2, %s1447_s18  ;;  %p1453_p2 = scmp.lt.s32.totalorder %s1447_s18, %s1447_s18 }
  0x4f   :  { %1290 = vmatpush1.xpose.msk.msra.mxu1 %vm176_vm0, %v132_v20  ;;  %1399 = vmatprep.mubr.msk.f32.mxu1 %vm176_vm0, %v1849_v21 }
  0x50   :  { %837 = vmatprep.subr.mxu1 %v1470_v13  ;;  %1406 = vmatpush3.xpose.msk.msra.mxu0 %vm176_vm0, %v100_v25  ;;  %p1454_p3 = por %p1453_p2, %p1452_p1 }
  0x51   :  { %1360 = vmatmul.mubr.msk.f32.gmra.mxu0 %vm176_vm0, %v1849_v21  ;;  %1407 = vmatprep.subr.msk.mxu0 %vm176_vm0, %v115_v26 }
  0x52   :  { %1400 = vmatmul.mubr.msk.f32.gmra.mxu1 %vm176_vm0, %v1849_v21  ;;  %1433 = vmatprep.mubr.msk.f32.mxu0 %vm176_vm0, %v1609_v28  ;;  %p1455_p4 = pnand %p1454_p3, %p1448_p0 }
  0x53   :  { %1291 = vmatpush1.xpose.msk.msra.mxu1 %vm176_vm0, %v131_v23  ;;  %895 = vmatprep.mubr.f32.mxu1 %v1470_v13 }
  0x54   :  { %839 = vmatprep.subr.mxu1 %v1470_v13  ;;  %1408 = vmatpush3.xpose.msk.msra.mxu0 %vm176_vm0, %v99_v29 }
  0x55   :  { %1409 = vmatprep.subr.msk.mxu0 %vm176_vm0, %v114_v30 }
  0x57   :  { %1292 = vmatpush1.xpose.msk.msra.mxu1 %vm176_vm0, %v130_v27 }
  0x58   :  { %841 = vmatprep.subr.mxu1 %v1470_v13  ;;  %1410 = vmatpush3.xpose.msk.msra.mxu0 %vm176_vm0, %v98_v32 }
  0x59   :  { %1411 = vmatprep.subr.msk.mxu0 %vm176_vm0, %v113_v33 }
  0x5b   :  { %1293 = vmatpush1.xpose.msk.msra.mxu1 %vm176_vm0, %v129_v31 }
  0x5c   :  { %843 = vmatprep.subr.mxu1 %v1470_v13  ;;  %1412 = vmatpush3.xpose.msk.msra.mxu0 %vm176_vm0, %v97_v35 }
  0x5d   :  { %1413 = vmatprep.subr.msk.mxu0 %vm176_vm0, %v112_v36 }
  0x5f   :  { %1294 = vmatpush1.xpose.msk.msra.mxu1 %vm176_vm0, %v128_v34 }
  0x60   :  { %845 = vmatprep.subr.mxu1 %v1470_v13  ;;  %1414 = vmatpush3.xpose.msk.msra.mxu0 %vm176_vm0, %v96_v38 }
  0x61   :  { %1415 = vmatprep.subr.msk.mxu0 %vm176_vm0, %v111_v39 }
  0x63   :  { %1295 = vmatpush1.xpose.msk.msra.mxu1 %vm176_vm0, %v127_v37 }
  0x64   :  { %847 = vmatprep.subr.mxu1 %v1470_v13  ;;  %1416 = vmatpush3.xpose.msk.msra.mxu0 %vm176_vm0, %v95_v41 }
  0x65   :  { %1417 = vmatprep.subr.msk.mxu0 %vm176_vm0, %v110_v42 }
  0x67   :  { %1296 = vmatpush1.xpose.msk.msra.mxu1 %vm176_vm0, %v126_v40 }
  0x68   :  { %849 = vmatprep.subr.mxu1 %v1470_v13  ;;  %1418 = vmatpush3.xpose.msk.msra.mxu0 %vm176_vm0, %v94_v44 }
  0x69   :  { %1419 = vmatprep.subr.msk.mxu0 %vm176_vm0, %v109_v45 }
  0x6b   :  { %1297 = vmatpush1.xpose.msk.msra.mxu1 %vm176_vm0, %v125_v43 }
  0x6c   :  { %851 = vmatprep.subr.mxu1 %v1470_v13  ;;  %1420 = vmatpush3.xpose.msk.msra.mxu0 %vm176_vm0, %v93_v47 }
  0x6d   :  { %1421 = vmatprep.subr.msk.mxu0 %vm176_vm0, %v108_v48 }
  0x6f   :  { %1298 = vmatpush1.xpose.msk.msra.mxu1 %vm176_vm0, %v124_v46 }
  0x70   :  { %853 = vmatprep.subr.mxu1 %v1470_v13  ;;  %1422 = vmatpush3.xpose.msk.msra.mxu0 %vm176_vm0, %v92_v50 }
  0x71   :  { %1423 = vmatprep.subr.msk.mxu0 %vm176_vm0, %v107_v51 }
  0x73   :  { %1299 = vmatpush1.xpose.msk.msra.mxu1 %vm176_vm0, %v123_v49 }
  0x74   :  { %855 = vmatprep.subr.mxu1 %v1470_v13  ;;  %1424 = vmatpush3.xpose.msk.msra.mxu0 %vm176_vm0, %v91_v53 }
  0x75   :  { %1425 = vmatprep.subr.msk.mxu0 %vm176_vm0, %v106_v54 }
  0x77   :  { %1300 = vmatpush1.xpose.msk.msra.mxu1 %vm176_vm0, %v122_v52 }
  0x78   :  { %857 = vmatprep.subr.mxu1 %v1470_v13  ;;  %1426 = vmatpush3.xpose.msk.msra.mxu0 %vm176_vm0, %v90_v56 }
  0x79   :  { %1427 = vmatprep.subr.msk.mxu0 %vm176_vm0, %v105_v57 }
  0x7b   :  { %1301 = vmatpush1.xpose.msk.msra.mxu1 %vm176_vm0, %v121_v55 }
  0x7c   :  { %859 = vmatprep.subr.mxu1 %v1470_v13  ;;  %1428 = vmatpush3.xpose.msk.msra.mxu0 %vm176_vm0, %v89_v59 }
  0x7d   :  { %1429 = vmatprep.subr.msk.mxu0 %vm176_vm0, %v104_v60 }
  0x7f   :  { %1302 = vmatpush1.xpose.msk.msra.mxu1 %vm176_vm0, %v120_v58 }
  0x80   :  { %861 = vmatprep.subr.mxu1 %v1470_v13  ;;  %1430 = vmatpush3.xpose.msk.msra.mxu0 %vm176_vm0, %v88_v62 }
  0x81   :  { %1431 = vmatprep.subr.msk.mxu0 %vm176_vm0, %v103_v63 }
  0x83   :  { %1303 = vmatpush1.xpose.msk.msra.mxu1 %vm176_vm0, %v119_v61 }
  0x84   :  { %869 = vmatprep.subr.mxu1 %v1470_v13  ;;  %1432 = vmatpush3.xpose.msk.msra.mxu0 %vm176_vm0, %v87_v1 }
  0x87   :  { %1304 = vmatpush2.xpose.msk.msra.mxu1 %vm176_vm0, %v147_v0  ;;  %1434 = vmatmul.mubr.msk.f32.vlgmr.msra.gmra.mxu0 %vm176_vm0, %v1609_v28 }
  0x88   :  { %871 = vmatprep.subr.mxu1 %v1470_v13  ;;  %1435 = vmatprep.mubr.msk.f32.mxu0 %vm176_vm0, %v1805_v15 }
  0x8b   :  { %1305 = vmatpush2.xpose.msk.msra.mxu1 %vm176_vm0, %v146_v2  ;;  %1436 = vmatmul.mubr.msk.f32.gmra.mxu0 %vm176_vm0, %v1805_v15 }
  0x8c   :  { %873 = vmatprep.subr.mxu1 %v1470_v13  ;;  %1437 = vmatprep.mubr.msk.f32.mxu0 %vm176_vm0, %v1827_v18  ;;  %v2139_v30 = vpop.permute.xlu0 %158 }
  0x8f   :  { %1306 = vmatpush2.xpose.msk.msra.mxu1 %vm176_vm0, %v145_v3  ;;  %1438 = vmatmul.mubr.msk.f32.gmra.mxu0 %vm176_vm0, %v1827_v18 }
  0x90   :  { %875 = vmatprep.subr.mxu1 %v1470_v13  ;;  %1439 = vmatprep.mubr.msk.f32.mxu0 %vm176_vm0, %v1849_v21  ;;  %v2143_v32 = vpop.permute.xlu0 %163 }
  0x93   :  { %1307 = vmatpush2.xpose.msk.msra.mxu1 %vm176_vm0, %v144_v4  ;;  %1440 = vmatmul.mubr.msk.f32.gmra.mxu0 %vm176_vm0, %v1849_v21 }
  0x94   :  { %877 = vmatprep.subr.mxu1 %v1470_v13  ;;  %v2154_v48 = vpop.permute.xlu0 %958 }
  0x97   :  { %1308 = vmatpush2.xpose.msk.msra.mxu1 %vm176_vm0, %v143_v5 }
  0x98   :  { %879 = vmatprep.subr.mxu1 %v1470_v13 }
  0x9b   :  { %1309 = vmatpush2.xpose.msk.msra.mxu1 %vm176_vm0, %v142_v6 }
  0x9c   :  { %881 = vmatprep.subr.mxu1 %v1470_v13 }
  0x9f   :  { %1310 = vmatpush2.xpose.msk.msra.mxu1 %vm176_vm0, %v141_v7 }
  0xa0   :  { %883 = vmatprep.subr.mxu1 %v1470_v13 }
  0xa3   :  { %1311 = vmatpush2.xpose.msk.msra.mxu1 %vm176_vm0, %v140_v8 }
  0xa4   :  { %885 = vmatprep.subr.mxu1 %v1470_v13 }
  0xa7   :  { %1312 = vmatpush2.xpose.msk.msra.mxu1 %vm176_vm0, %v139_v9 }
  0xa8   :  { %887 = vmatprep.subr.mxu1 %v1470_v13 }
  0xab   :  { %1313 = vmatpush2.xpose.msk.msra.mxu1 %vm176_vm0, %v138_v10 }
  0xac   :  { %889 = vmatprep.subr.mxu1 %v1470_v13 }
  0xaf   :  { %1314 = vmatpush2.xpose.msk.msra.mxu1 %vm176_vm0, %v137_v11 }
  0xb0   :  { %891 = vmatprep.subr.mxu1 %v1470_v13 }
  0xb3   :  { %1315 = vmatpush2.xpose.msk.msra.mxu1 %vm176_vm0, %v136_v12 }
  0xb4   :  { %893 = vmatprep.subr.mxu1 %v1470_v13 }
  0xb7   :  { %1316 = vmatpush2.xpose.msk.msra.mxu1 %vm176_vm0, %v135_v14 }
  0xba   :  { %1317 = vmatmul.mubr.msk.f32.vlgmr.msra.gmra.mxu1 %vm176_vm0, %v1609_v28 }
  0xbb   :  { %901 = vmatprep.mubr.f32.mxu1 %v1470_v13 }
  0xbe   :  { %1318 = vmatmul.mubr.msk.f32.gmra.mxu1 %vm176_vm0, %v1805_v15 }
  0xbf   :  { %907 = vmatprep.mubr.f32.mxu1 %v1470_v13 }
  0xc2   :  { %1319 = vmatmul.mubr.msk.f32.gmra.mxu1 %vm176_vm0, %v1827_v18 }
  0xc3   :  { %913 = vmatprep.mubr.f32.mxu1 %v1470_v13  ;;  %v2141_v13 = vpop.permute.xlu1 %168 }
  0xc6   :  { %1320 = vmatmul.mubr.msk.f32.gmra.mxu1 %vm176_vm0, %v1849_v21 }
  0xc7   :  { %v2149_v38 = vpop.permute.xlu1 %173 }
  0xcb   :  { %v2158_v55 = vpop.permute.xlu1 %963 }
 0x105   :  { %v630_v16 = vpop.f32.mrf.mxu0 }
 0x106   :  { %v719_v23 = vpop.f32.mrf.mxu1  ;;  %v631_v34 = vadd.f32 %v630_v16, %v2139_v30 }
 0x107   :  { %v632_v17 = vpop.f32.mrf.mxu0  ;;  %v720_v35 = vadd.f32 %v719_v23, %v2139_v30 }
 0x108   :  { %v721_v25 = vpop.f32.mrf.mxu1  ;;  %v633_v36 = vadd.f32 %v632_v17, %v2139_v30  ;;  %v920_v44 = vmax.f32 %v631_v34, 0.0 }
 0x109   :  { %v636_v19 = vpop.f32.mrf.mxu0  ;;  %v722_v37 = vadd.f32 %v721_v25, %v2139_v30  ;;  %v922_v45 = vmax.f32 %v720_v35, 0.0 }
 0x10a   :  { %v725_v27 = vpop.f32.mrf.mxu1  ;;  %v637_v40 = vadd.f32 %v636_v19, %v2143_v32  ;;  %v921_v46 = vmax.f32 %v633_v36, 0.0  ;;  %v976_v60 = vmul.f32 %v2154_v48, %v920_v44  ;;  %v2190_v44 = vpop.permute.xlu1 %973 }
 0x10b   :  { %v638_v20 = vpop.f32.mrf.mxu0  ;;  %v726_v41 = vadd.f32 %v725_v27, %v2143_v32  ;;  %v923_v47 = vmax.f32 %v722_v37, 0.0  ;;  %v978_v62 = vmul.f32 %v2154_v48, %v922_v45  ;;  %v2179_v27 = vpop.permute.xlu0 %968 }
 0x10c   :  { %v727_v18 = vpop.f32.mrf.mxu1  ;;  %v639_v42 = vadd.f32 %v638_v20, %v2143_v32  ;;  %v928_v50 = vmax.f32 %v637_v40, 0.0  ;;  %v977_v61 = vmul.f32 %v2154_v48, %v921_v46 }
 0x10d   :  { %v642_v28 = vpop.f32.mrf.mxu0  ;;  %v930_v51 = vmax.f32 %v726_v41, 0.0  ;;  %v728_v52 = vadd.f32 %v727_v18, %v2143_v32  ;;  %v979_v63 = vmul.f32 %v2154_v48, %v923_v47 }
 0x10e   :  { %v731_v21 = vpop.f32.mrf.mxu1  ;;  %v643_v53 = vadd.f32 %v642_v28, %v2141_v13  ;;  %v929_v54 = vmax.f32 %v639_v42, 0.0  ;;  %v984_v6 = vmul.f32 %v2158_v55, %v928_v50 }
 0x10f   :  { %v644_v22 = vpop.f32.mrf.mxu0  ;;  %v732_v56 = vadd.f32 %v731_v21, %v2141_v13  ;;  %v931_v5 = vmax.f32 %v728_v52, 0.0  ;;  %v986_v7 = vmul.f32 %v2158_v55, %v930_v51 }
 0x110   :  { %v733_v39 = vpop.f32.mrf.mxu1  ;;  %v645_v57 = vadd.f32 %v644_v22, %v2141_v13  ;;  %v936_v8 = vmax.f32 %v643_v53, 0.0  ;;  %v985_v9 = vmul.f32 %v2158_v55, %v929_v54 }
 0x111   :  { %v648_v24 = vpop.f32.mrf.mxu0  ;;  %v734_v58 = vadd.f32 %v733_v39, %v2141_v13  ;;  %v938_v10 = vmax.f32 %v732_v56, 0.0  ;;  %v1026_v52 = vadd.f32 %v986_v7, %v978_v62 }
 0x112   :  { %v737_v49 = vpop.f32.mrf.mxu1  ;;  %v937_v11 = vmax.f32 %v645_v57, 0.0  ;;  %v649_v16 = vadd.f32 %v648_v24, %v2149_v38  ;;  %v992_v24 = vmul.f32 %v2179_v27, %v936_v8 }
 0x113   :  { %v650_v15 = vpop.f32.mrf.mxu0  ;;  %v939_v12 = vmax.f32 %v734_v58, 0.0  ;;  %v738_v17 = vadd.f32 %v737_v49, %v2149_v38  ;;  %v994_v50 = vmul.f32 %v2179_v27, %v938_v10 }
 0x114   :  { %v739_v0 = vpop.f32.mrf.mxu1  ;;  %v651_v19 = vadd.f32 %v650_v15, %v2149_v38  ;;  %v993_v21 = vmul.f32 %v2179_v27, %v937_v11  ;;  %v944_v35 = vmax.f32 %v649_v16, 0.0 }
 0x115   :  { %v740_v20 = vadd.f32 %v739_v0, %v2149_v38  ;;  %v995_v15 = vmul.f32 %v2179_v27, %v939_v12  ;;  %v946_v36 = vmax.f32 %v738_v17, 0.0  ;;  %v1027_v62 = vadd.f32 %v1026_v52, %v994_v50 }
 0x116   :  { %v945_v37 = vmax.f32 %v651_v19, 0.0  ;;  %v1000_v54 = vmul.f32 %v2190_v44, %v944_v35 }
 0x117   :  { %v947_v39 = vmax.f32 %v740_v20, 0.0 }
 0x118   :  { %v1001_v56 = vmul.f32 %v2190_v44, %v945_v37 }
 0x119   :  { %v1003_v57 = vmul.f32 %v2190_v44, %v947_v39 }
 0x147   :  { %v808_v26 = vpop.f32.mrf.mxu0 }
 0x148   :  { %v809_v1 = vadd.f32 %v808_v26, %v2139_v30  ;;  %v987_v26 = vmul.f32 %v2158_v55, %v931_v5 }
 0x149   :  { %v810_v29 = vpop.f32.mrf.mxu0 }
 0x14a   :  { %v811_v2 = vadd.f32 %v810_v29, %v2139_v30  ;;  %v924_v28 = vmax.f32 %v809_v1, 0.0  ;;  %v1008_v29 = vadd.f32 %v984_v6, %v976_v60  ;;  %v1035_v53 = vadd.f32 %v987_v26, %v979_v63 }
 0x14b   :  { %v814_v31 = vpop.f32.mrf.mxu0 }
 0x14c   :  { %v815_v3 = vadd.f32 %v814_v31, %v2143_v32  ;;  %v925_v22 = vmax.f32 %v811_v2, 0.0  ;;  %v980_v40 = vmul.f32 %v2154_v48, %v924_v28  ;;  %v1009_v51 = vadd.f32 %v1008_v29, %v992_v24 }
 0x14d   :  { %v816_v33 = vpop.f32.mrf.mxu0  ;;  %v1036_v60 = vadd.f32 %v1035_v53, %v995_v15  ;;  %v1091_v29 = vlaneseq }
 0x14e   :  { %v817_v4 = vadd.f32 %v816_v33, %v2143_v32  ;;  %v932_v23 = vmax.f32 %v815_v3, 0.0  ;;  %v1017_v33 = vadd.f32 %v985_v9, %v977_v61  ;;  %v981_v41 = vmul.f32 %v2154_v48, %v925_v22 }
 0x14f   :  { %v820_v43 = vpop.f32.mrf.mxu0  ;;  %v1010_v63 = vadd.f32 %v1009_v51, %v1000_v54  ;;  %v1037_v6 = vadd.f32 %v1036_v60, %v1003_v57  ;;  %vm1163_vm2 = vcmp.lt.s32.totalorder %v1091_v29, 1000 }
 0x150   :  { %v933_v25 = vmax.f32 %v817_v4, 0.0  ;;  %v821_v18 = vadd.f32 %v820_v43, %v2141_v13  ;;  %v988_v42 = vmul.f32 %v2158_v55, %v932_v23  ;;  %v1018_v58 = vadd.f32 %v1017_v33, %v993_v21 }
 0x151   :  { %v822_v59 = vpop.f32.mrf.mxu0  ;;  %v1038_v17 = vrot.slane %v1037_v6, 4 }
 0x152   :  { %v823_v31 = vadd.f32 %v822_v59, %v2141_v13  ;;  %v989_v43 = vmul.f32 %v2158_v55, %v933_v25  ;;  %v940_v45 = vmax.f32 %v821_v18, 0.0  ;;  %v1002_v59 = vmul.f32 %v2190_v44, %v946_v36 }
 0x153   :  { %v826_v14 = vpop.f32.mrf.mxu0  ;;  %v1044_v61 = vadd.f32 %v988_v42, %v980_v40  ;;  %v1019_v5 = vadd.f32 %v1018_v58, %v1001_v56  ;;  %v1039_v21 = vadd.f32 %v1038_v17, %v1037_v6  ;;  %v2208_v42 = vshrl.u32 %v1091_v29, 7 }
 0x154   :  { %v941_v46 = vmax.f32 %v823_v31, 0.0  ;;  %v827_v47 = vadd.f32 %v826_v14, %v2149_v38  ;;  %v1053_v0 = vadd.f32 %v989_v43, %v981_v41  ;;  %v996_v1 = vmul.f32 %v2179_v27, %v940_v45 }
 0x155   :  { %v828_v34 = vpop.f32.mrf.mxu0  ;;  %v1028_v7 = vadd.f32 %v1027_v62, %v1002_v59  ;;  %v1011_v14 = vrot.slane %v1010_v63, 4  ;;  %v1020_v16 = vrot.slane %v1019_v5, 4  ;;  %v1040_v50 = vrot.slane %v1039_v21, 2 }
 0x156   :  { %v829_v49 = vadd.f32 %v828_v34, %v2149_v38  ;;  %v997_v2 = vmul.f32 %v2179_v27, %v941_v46  ;;  %v948_v3 = vmax.f32 %v827_v47, 0.0  ;;  %v1045_v8 = vadd.f32 %v1044_v61, %v996_v1 }
 0x157   :  { %v1029_v20 = vrot.slane %v1028_v7, 4  ;;  %v1012_v31 = vadd.f32 %v1011_v14, %v1010_v63  ;;  %v1021_v24 = vadd.f32 %v1020_v16, %v1019_v5 }
 0x158   :  { %v949_v4 = vmax.f32 %v829_v49, 0.0  ;;  %v1054_v9 = vadd.f32 %v1053_v0, %v997_v2  ;;  %v1004_v10 = vmul.f32 %v2190_v44, %v948_v3 }
 0x159   :  { %v1030_v33 = vadd.f32 %v1029_v20, %v1028_v7  ;;  %v1013_v47 = vrot.slane %v1012_v31, 2  ;;  %v1022_v49 = vrot.slane %v1021_v24, 2 }
 0x15a   :  { %v1005_v11 = vmul.f32 %v2190_v44, %v949_v4  ;;  %v1046_v28 = vadd.f32 %v1045_v8, %v1004_v10  ;;  %v1041_v4 = vadd.f32 %v1040_v50, %v1039_v21  ;;  %v1089_v21 = vpop.permute.xlu0 %1088 }
 0x15b   :  { %v1031_v53 = vrot.slane %v1030_v33, 2  ;;  %v1023_v3 = vadd.f32 %v1022_v49, %v1021_v24 }
 0x15c   :  { %v1055_v22 = vadd.f32 %v1054_v9, %v1005_v11  ;;  %v1047_v36 = vrot.slane %v1046_v28, 4  ;;  %v1042_v20 = vrot.slane %v1041_v4, 1 }
 0x15d   :  { %v1032_v8 = vadd.f32 %v1031_v53, %v1030_v33 }
 0x15e   :  { %v1056_v37 = vrot.slane %v1055_v22, 4  ;;  %v1048_v54 = vadd.f32 %v1047_v36, %v1046_v28  ;;  %v1043_v36 = vadd.f32 %v1042_v20, %v1041_v4 }
 0x160   :  { %v1057_v56 = vadd.f32 %v1056_v37, %v1055_v22 }
 0x162   :  { %v1058_v6 = vrot.slane %v1057_v56, 2 }
 0x17a   :  { %v897_v12 = vpop.f32.mrf.mxu1 }
 0x17b   :  { %v898_v23 = vadd.f32 %v897_v12, %v2139_v30 }
 0x17c   :  { %v899_v19 = vpop.f32.mrf.mxu1 }
 0x17d   :  { %v900_v25 = vadd.f32 %v899_v19, %v2139_v30  ;;  %v926_v39 = vmax.f32 %v898_v23, 0.0  ;;  %v1093_v23 = vsub.s32 0, %v2208_v42 }
 0x17e   :  { %v903_v26 = vpop.f32.mrf.mxu1 }
 0x17f   :  { %v904_v18 = vadd.f32 %v903_v26, %v2143_v32  ;;  %v927_v40 = vmax.f32 %v900_v25, 0.0  ;;  %v982_v57 = vmul.f32 %v2154_v48, %v926_v39 }
 0x180   :  { %v905_v15 = vpop.f32.mrf.mxu1 }
 0x181   :  { %v934_v34 = vmax.f32 %v904_v18, 0.0  ;;  %v906_v35 = vadd.f32 %v905_v15, %v2143_v32  ;;  %v983_v58 = vmul.f32 %v2154_v48, %v927_v40  ;;  %v1049_v48 = vrot.slane %v1048_v54, 2 }
 0x182   :  { %v909_v41 = vpop.f32.mrf.mxu1  ;;  %v1033_v18 = vrot.slane %v1032_v8, 1  ;;  %v1094_v40 = vrot.slane %v1089_v21, %v1093_v23 }
 0x183   :  { %v935_v30 = vmax.f32 %v906_v35, 0.0  ;;  %v910_v43 = vadd.f32 %v909_v41, %v2141_v13  ;;  %v990_v45 = vmul.f32 %v2158_v55, %v934_v34  ;;  %v1072_v7 = vsel %vm1071_vm1, %v983_v58, 0.0 }
 0x184   :  { %v911_v46 = vpop.f32.mrf.mxu1  ;;  %v1050_v28 = vadd.f32 %v1049_v48, %v1048_v54  ;;  %v1098_v50 = vadd.f32 %v1094_v40, %v1043_v36 }
 0x185   :  { %v991_v51 = vmul.f32 %v2158_v55, %v935_v30  ;;  %v942_v32 = vmax.f32 %v910_v43, 0.0  ;;  %v912_v52 = vadd.f32 %v911_v46, %v2141_v13  ;;  %v1062_v1 = vadd.f32 %v990_v45, %v982_v57 }
 0x186   :  { %v915_v59 = vpop.f32.mrf.mxu1  ;;  %v1014_v55 = vadd.f32 %v1013_v47, %v1012_v31  ;;  %v1471_v31 = vmov 1966171168   ;;  %v1034_v30 = vadd.f32 %v1033_v18, %v1032_v8 }
 0x187   :  { %v998_v60 = vmul.f32 %v2179_v27, %v942_v32  ;;  %v943_v61 = vmax.f32 %v912_v52, 0.0  ;;  %v916_v0 = vadd.f32 %v915_v59, %v2149_v38  ;;  %v1073_v13 = vsel %vm1071_vm1, %v991_v51, 0.0 }
 0x188   :  { %v917_v2 = vpop.f32.mrf.mxu1  ;;  %v1074_v14 = vadd.f32 %v1073_v13, %v1072_v7  ;;  %v1015_v16 = vrot.slane %v1014_v55, 1  ;;  %v1116_v24 = vunpack.c.l.s4 %v1471_v31  ;;  %v1097_v54 = vadd.f32 %v1094_v40, %v1034_v30 }
 0x189   :  { %v999_v62 = vmul.f32 %v2179_v27, %v943_v61  ;;  %v950_v63 = vmax.f32 %v916_v0, 0.0  ;;  %v918_v5 = vadd.f32 %v917_v2, %v2149_v38  ;;  %v1063_v9 = vadd.f32 %v1062_v1, %v998_v60 }
 0x18a   :  { %v1024_v27 = vrot.slane %v1023_v3, 1  ;;  %v1059_v38 = vadd.f32 %v1058_v6, %v1057_v56  ;;  %v1016_v34 = vadd.f32 %v1015_v16, %v1014_v55  ;;  %v1117_v43 = vunpack.c.0.s8 %v1116_v24 }
 0x18b   :  { %v1075_v10 = vsel %vm1071_vm1, %v999_v62, 0.0  ;;  %v1006_v11 = vmul.f32 %v2190_v44, %v950_v63  ;;  %v951_v12 = vmax.f32 %v918_v5, 0.0  ;;  %v1112_v59 = vcombine.low %v1097_v54, %v1098_v50 }
 0x18c   :  { %v1076_v22 = vadd.f32 %v1075_v10, %v1074_v14  ;;  %v1025_v35 = vadd.f32 %v1024_v27, %v1023_v3  ;;  %v1060_v37 = vrot.slane %v1059_v38, 1  ;;  %v1095_v47 = vadd.f32 %v1094_v40, %v1016_v34 }
 0x18d   :  { %v1064_v17 = vadd.f32 %v1063_v9, %v1006_v11  ;;  %v1007_v19 = vmul.f32 %v2190_v44, %v951_v12  ;;  %v1051_v44 = vrot.slane %v1050_v28, 1  ;;  %v1120_v57 = vsub.s32 %v1117_v43, %v2208_v42 }
 0x18e   :  { %v1096_v49 = vadd.f32 %v1094_v40, %v1025_v35  ;;  %v1061_v32 = vadd.f32 %v1060_v37, %v1059_v38 }
 0x18f   :  { %v1065_v25 = vrot.slane %v1064_v17, 4  ;;  %v1077_v26 = vsel %vm1071_vm1, %v1007_v19, 0.0  ;;  %v1052_v51 = vadd.f32 %v1051_v44, %v1050_v28  ;;  %v1128_v62 = vrot.slane %v1112_v59, %v1120_v57 }
 0x190   :  { %v1078_v15 = vadd.f32 %v1077_v26, %v1076_v22  ;;  %v1111_v58 = vcombine.low %v1095_v47, %v1096_v49  ;;  %v1100_v61 = vadd.f32 %v1094_v40, %v1061_v32 }
 0x191   :  { %v1066_v33 = vadd.f32 %v1065_v25, %v1064_v17  ;;  %v1099_v60 = vadd.f32 %v1094_v40, %v1052_v51 }
 0x192   :  { %v1079_v39 = vrot.slane %v1078_v15, 4  ;;  %v1121_v55 = vrot.slane %v1111_v58, %v1120_v57 }
 0x193   :  { %v1067_v41 = vrot.slane %v1066_v33, 2  ;;  %v1113_v13 = vcombine.low %v1099_v60, %v1100_v61 }
 0x194   :  { %v1080_v45 = vadd.f32 %v1079_v39, %v1078_v15  ;;  %v1143_v6 = vcombine.low %v1121_v55, %v1128_v62 }
 0x195   :  { %v1068_v46 = vadd.f32 %v1067_v41, %v1066_v33  ;;  %v1135_v5 = vrot.slane %v1113_v13, %v1120_v57 }
 0x196   :  { %v1081_v52 = vrot.slane %v1080_v45, 2  ;;  %v1151_v42 = vrot.slane %v1143_v6, %v1120_v57 }
 0x197   :  { %v1069_v53 = vrot.slane %v1068_v46, 1 }
 0x198   :  { %v1082_v56 = vadd.f32 %v1081_v52, %v1080_v45 }
 0x199   :  { %v1070_v0 = vadd.f32 %v1069_v53, %v1068_v46 }
 0x19a   :  { %v1083_v1 = vrot.slane %v1082_v56, 1 }
 0x19b   :  { %v1101_v3 = vadd.f32 %v1094_v40, %v1070_v0 }
 0x19c   :  { %v1084_v2 = vadd.f32 %v1083_v1, %v1082_v56 }
 0x19e   :  { %v1102_v4 = vadd.f32 %v1094_v40, %v1084_v2 }
 0x1a0   :  { %v1114_v63 = vcombine.low %v1101_v3, %v1102_v4 }
 0x1a2   :  { %v1142_v48 = vrot.slane %v1114_v63, %v1120_v57 }
 0x1a4   :  { %v1144_v7 = vcombine.low %v1135_v5, %v1142_v48 }
 0x1a6   :  { %v1158_v8 = vrot.slane %v1144_v7, %v1120_v57 }
 0x1a8   :  { %v1159_v9 = vcombine.low %v1151_v42, %v1158_v8 }
 0x1aa   :  { %1165 = vst.msk [vmem:[#allocation3] sm:$0xff] %vm1163_vm2, %v1159_v9 }
 0x1ab   :  { %1458 = shalt.err (!%p1455_p4)
}
 0x1ac   :  { %1175 = dma.vmem_to_hbm [thread:$0]  %s1173_s2, 128, %s2237_s5, [#allocation4]  }
 0x1ad   :  { %1467 = dma.done.wait [#allocation4], 128  }
 0x1ae   :  { %1468 = vsyncadd [#allocation4], 4294967168 }
 0x1af   :  { %1179 = vsyncpa [#allocation4], 1 }

</bundles_post_ra>
